<compile_context>
chip_gen: v5e
topology: v5e:2x2
jax: 0.10.0
libtpu: 0.0.40
codegen_flags: <defaults>
</compile_context>

<pallas_src>
import functools

import jax
import jax.numpy as jnp
from jax.experimental import pallas as pl
from jax.experimental.pallas import tpu as pltpu

EPS = 1e-5


def _round_up(x, m):
    return ((x + m - 1) // m) * m


def _adain_kernel(x_ref, mean_style_ref, std_style_ref, o_ref, *, n_valid):
    # x_ref / o_ref block: (TC, HW_pad); style refs: (TC, 1). n_valid = true H*W.
    x = x_ref[...]
    xf = x.astype(jnp.float32)

    # Single-pass moments over the spatial (lane) axis. Zero padding along HW
    # contributes nothing to the sums, so dividing by the *true* n is exact.
    s = jnp.sum(xf, axis=-1, keepdims=True)                       # (TC, 1)
    ss = jnp.sum(xf * xf, axis=-1, keepdims=True)                 # (TC, 1)
    mean_feat = s * (1.0 / n_valid)
    # torch.std defaults to unbiased (ddof=1): divide by (n - 1).
    var = (ss - n_valid * mean_feat * mean_feat) / (n_valid - 1)
    var = jnp.maximum(var, 0.0)          # guard catastrophic cancellation
    std_feat = jnp.sqrt(var) + EPS       # EPS outside sqrt (matches torch module)

    # Fuse normalization into a per-channel affine: only TC divides; the
    # streaming pass over (TC, HW_pad) is a single multiply-add per element.
    mean_style = mean_style_ref[...].astype(jnp.float32)
    std_style = std_style_ref[...].astype(jnp.float32)
    gain = std_style / std_feat                                   # (TC, 1)
    bias = mean_style - mean_feat * gain                          # (TC, 1)

    if o_ref.dtype == jnp.bfloat16:
        # bf16 streaming pass halves vreg pressure on v6e/v7x; stats stay f32.
        out = x * gain.astype(jnp.bfloat16) + bias.astype(jnp.bfloat16)
    else:
        out = xf * gain + bias
    o_ref[...] = out.astype(o_ref.dtype)


def _choose_channel_tile(c, hw_pad, itemsize, sub):
    # Live VMEM per grid step ~= input block + output block (each double
    # buffered -> 4 * itemsize B/elem) plus the f32 working copy used by the
    # reduction (~8 B/elem). Keep it comfortably under the default scoped-VMEM
    # limit on every generation (16 MiB v5e, 32 MiB v6e/v7x, 64 MiB physical
    # on v7x), so no vmem_limit_bytes override is needed.
    budget = 12 * 1024 * 1024
    bytes_per_channel = hw_pad * (4 * itemsize + 8)
    tc = max(sub, (budget // bytes_per_channel) // sub * sub)
    # TODO(synk): for very large feature maps (sub * hw_pad alone exceeding the
    # VMEM budget) split HW across an "arbitrary" grid axis with a two-pass
    # (sum/sumsq accumulate, then normalize) scheme instead of one HW-resident block.
    return int(min(_round_up(c, sub), tc))


def adain(x, mean_style, std_style):
    """x: (B, C, H, W); mean_style, std_style: (B, C, 1). Returns (B, C, H, W)."""
    B, C, H, W = x.shape
    HW = H * W
    # ddof=1 std is undefined for a single spatial element (matches torch semantics).
    assert HW > 1, "AdaIn requires H*W > 1 for unbiased std (ddof=1)."

    itemsize = jnp.dtype(x.dtype).itemsize
    sub = {4: 8, 2: 16, 1: 32}.get(itemsize, 8)   # sublane multiple per dtype
    HWp = _round_up(HW, 128)                      # lane-dense last dim
    TC = _choose_channel_tile(C, HWp, itemsize, sub)
    Cp = _round_up(C, TC)

    x_flat = x.reshape(B, C, HW)
    mean_style = jnp.asarray(mean_style).reshape(B, C, 1)
    std_style = jnp.asarray(std_style).reshape(B, C, 1)

    if Cp != C or HWp != HW:
        x_flat = jnp.pad(x_flat, ((0, 0), (0, Cp - C), (0, HWp - HW)))
    if Cp != C:
        mean_style = jnp.pad(mean_style, ((0, 0), (0, Cp - C), (0, 0)))
        std_style = jnp.pad(std_style, ((0, 0), (0, Cp - C), (0, 0)))

    kernel = functools.partial(_adain_kernel, n_valid=HW)

    out_flat = pl.pallas_call(
        kernel,
        out_shape=jax.ShapeDtypeStruct((B, Cp, HWp), x.dtype),
        grid_spec=pltpu.PrefetchScalarGridSpec(
            num_scalar_prefetch=0,
            grid=(B, Cp // TC),
            in_specs=[
                # Leading batch dim squeezed -> kernel sees clean 2-D (TC, HWp) blocks.
                pl.BlockSpec((None, TC, HWp), lambda b, c: (b, c, 0)),
                pl.BlockSpec((None, TC, 1), lambda b, c: (b, c, 0)),
                pl.BlockSpec((None, TC, 1), lambda b, c: (b, c, 0)),
            ],
            out_specs=pl.BlockSpec((None, TC, HWp), lambda b, c: (b, c, 0)),
        ),
        compiler_params=pltpu.CompilerParams(
            dimension_semantics=("parallel", "parallel")),
    )(x_flat, mean_style, std_style)

    return out_flat[:, :C, :HW].reshape(B, C, H, W)


def adain_ref(x, mean_style, std_style):
    B, C, H, W = x.shape
    feat = x.reshape(B, C, -1).astype(jnp.float32)
    mean_feat = jnp.mean(feat, axis=2, keepdims=True)
    std_feat = jnp.std(feat, axis=2, ddof=1, keepdims=True) + EPS
    out = std_style * (feat - mean_feat) / std_feat + mean_style
    return out.reshape(B, C, H, W).astype(x.dtype)


if __name__ == "__main__":
    key = jax.random.PRNGKey(0)
    k1, k2, k3 = jax.random.split(key, 3)

    B, C, H, W = 2, 4, 16, 16
    x = jax.random.normal(k1, (B, C, H, W), dtype=jnp.float32)
    mean_style = jax.random.normal(k2, (B, C, 1), dtype=jnp.float32)
    std_style = jax.random.uniform(k3, (B, C, 1), dtype=jnp.float32) + 0.5

    out = adain(x, mean_style, std_style)
    out = jax.block_until_ready(out)

    ref = adain_ref(x, mean_style, std_style)
    assert out.shape == (B, C, H, W)
    # Single-pass variance + fused affine differ from the two-pass reference
    # only at f32 rounding level; 1e-4 comfortably covers it.
    assert jnp.allclose(out, ref, atol=1e-4, rtol=1e-4), "mismatch vs reference"

    print("KERNEL_OK")
</pallas_src>

<mosaic_0001>
module attributes {stable_mosaic.version = 11 : i64} {
  func.func @_adain_kernel(%arg0: i32, %arg1: i32, %arg2: memref<1x8x256xf32, #tpu.memory_space<vmem>>, %arg3: memref<1x8x1xf32, #tpu.memory_space<vmem>>, %arg4: memref<1x8x1xf32, #tpu.memory_space<vmem>>, %arg5: memref<1x8x256xf32, #tpu.memory_space<vmem>>) attributes {dimension_semantics = [#tpu.dimension_semantics<parallel>, #tpu.dimension_semantics<parallel>], iteration_bounds = array<i64: 2, 1>, scalar_prefetch = 0 : i64, scratch_operands = 0 : i64, tpu.core_type = #tpu.core_type<tc>, window_params = [{transform_indices = @transform_0, window_bounds = array<i64: 1, 8, 256>}, {transform_indices = @transform_1, window_bounds = array<i64: 1, 8, 1>}, {transform_indices = @transform_2, window_bounds = array<i64: 1, 8, 1>}, {transform_indices = @transform_3, window_bounds = array<i64: 1, 8, 256>}]} {
    %c0 = arith.constant 0 : index
    %c0_0 = arith.constant 0 : index
    %c0_1 = arith.constant 0 : index
    %0 = vector.load %arg2[%c0, %c0_0, %c0_1] : memref<1x8x256xf32, #tpu.memory_space<vmem>>, vector<1x8x256xf32>
    %1 = vector.shape_cast %0 : vector<1x8x256xf32> to vector<8x256xf32>
    %cst = arith.constant dense<0.000000e+00> : vector<8xf32>
    %2 = vector.multi_reduction <add>, %1, %cst [1] : vector<8x256xf32> to vector<8xf32>
    %3 = vector.shape_cast %2 : vector<8xf32> to vector<8x1xf32>
    %4 = arith.mulf %1, %1 : vector<8x256xf32>
    %cst_2 = arith.constant dense<0.000000e+00> : vector<8xf32>
    %5 = vector.multi_reduction <add>, %4, %cst_2 [1] : vector<8x256xf32> to vector<8xf32>
    %6 = vector.shape_cast %5 : vector<8xf32> to vector<8x1xf32>
    %cst_3 = arith.constant 3.906250e-03 : f32
    %7 = vector.broadcast %cst_3 : f32 to vector<8x1xf32>
    %8 = arith.mulf %3, %7 : vector<8x1xf32>
    %cst_4 = arith.constant 2.560000e+02 : f32
    %9 = vector.broadcast %cst_4 : f32 to vector<8x1xf32>
    %10 = arith.mulf %9, %8 : vector<8x1xf32>
    %11 = arith.mulf %10, %8 : vector<8x1xf32>
    %12 = arith.subf %6, %11 : vector<8x1xf32>
    %cst_5 = arith.constant 2.550000e+02 : f32
    %13 = vector.broadcast %cst_5 : f32 to vector<8x1xf32>
    %14 = arith.divf %12, %13 : vector<8x1xf32>
    %cst_6 = arith.constant 0.000000e+00 : f32
    %15 = vector.broadcast %cst_6 : f32 to vector<8x1xf32>
    %16 = arith.maximumf %14, %15 : vector<8x1xf32>
    %17 = math.sqrt %16 : vector<8x1xf32>
    %cst_7 = arith.constant 9.99999974E-6 : f32
    %18 = vector.broadcast %cst_7 : f32 to vector<8x1xf32>
    %19 = arith.addf %17, %18 : vector<8x1xf32>
    %c0_8 = arith.constant 0 : index
    %c0_9 = arith.constant 0 : index
    %c0_10 = arith.constant 0 : index
    %20 = vector.load %arg3[%c0_8, %c0_9, %c0_10] : memref<1x8x1xf32, #tpu.memory_space<vmem>>, vector<1x8x1xf32>
    %21 = vector.shape_cast %20 : vector<1x8x1xf32> to vector<8x1xf32>
    %c0_11 = arith.constant 0 : index
    %c0_12 = arith.constant 0 : index
    %c0_13 = arith.constant 0 : index
    %22 = vector.load %arg4[%c0_11, %c0_12, %c0_13] : memref<1x8x1xf32, #tpu.memory_space<vmem>>, vector<1x8x1xf32>
    %23 = vector.shape_cast %22 : vector<1x8x1xf32> to vector<8x1xf32>
    %24 = arith.divf %23, %19 : vector<8x1xf32>
    %25 = arith.mulf %8, %24 : vector<8x1xf32>
    %26 = arith.subf %21, %25 : vector<8x1xf32>
    %27 = vector.broadcast %24 : vector<8x1xf32> to vector<8x256xf32>
    %28 = arith.mulf %1, %27 : vector<8x256xf32>
    %29 = vector.broadcast %26 : vector<8x1xf32> to vector<8x256xf32>
    %30 = arith.addf %28, %29 : vector<8x256xf32>
    %c0_14 = arith.constant 0 : index
    %c0_15 = arith.constant 0 : index
    %c0_16 = arith.constant 0 : index
    %31 = vector.load %arg5[%c0_14, %c0_15, %c0_16] : memref<1x8x256xf32, #tpu.memory_space<vmem>>, vector<1x8x256xf32>
    %32 = vector.shape_cast %31 : vector<1x8x256xf32> to vector<8x256xf32>
    %33 = vector.shape_cast %30 : vector<8x256xf32> to vector<1x8x256xf32>
    tpu.vector_store %arg5[%c0_14, %c0_15, %c0_16], %33 {strides = array<i32>} : memref<1x8x256xf32, #tpu.memory_space<vmem>>, vector<1x8x256xf32>,
    return
  }
  func.func @transform_0(%arg0: i32, %arg1: i32) -> (i32, i32, i32) {
    %c0_i32 = arith.constant 0 : i32
    %c0_i32_0 = arith.constant 0 : i32
    return %arg0, %arg1, %c0_i32 : i32, i32, i32
  }
  func.func @transform_1(%arg0: i32, %arg1: i32) -> (i32, i32, i32) {
    %c0_i32 = arith.constant 0 : i32
    %c0_i32_0 = arith.constant 0 : i32
    return %arg0, %arg1, %c0_i32 : i32, i32, i32
  }
  func.func @transform_2(%arg0: i32, %arg1: i32) -> (i32, i32, i32) {
    %c0_i32 = arith.constant 0 : i32
    %c0_i32_0 = arith.constant 0 : i32
    return %arg0, %arg1, %c0_i32 : i32, i32, i32
  }
  func.func @transform_3(%arg0: i32, %arg1: i32) -> (i32, i32, i32) {
    %c0_i32 = arith.constant 0 : i32
    %c0_i32_0 = arith.constant 0 : i32
    return %arg0, %arg1, %c0_i32 : i32, i32, i32
  }
}

</mosaic_0001>

<bundles_post_ra>
// kernel: tpu_custom_call.1
= control target key start
LH: loop header
LB: loop body
LE: loop exit
PB: predicated region body
PF: predicated region fallthrough
CT: control target
= control target key end

     0   :  { %8 = vsyncpa [#allocation3], 0  ;;  %s755_s0 = inlined_call_operand.vmem [shape: f32[2,8,256], index: 0, kind: input, shape index: {}]   ;;  %s756_s1 = inlined_call_operand.vmem [shape: f32[2,8,1], index: 1, kind: input, shape index: {}]   ;;  %s757_s2 = inlined_call_operand.vmem [shape: f32[2,8,1], index: 2, kind: input, shape index: {}]   ;;  %s758_s3 = inlined_call_operand.hbm [shape: f32[2,8,256], index: 3, kind: output, shape index: {}]  }
   0x1   :  { %10 = vsyncpa [#allocation3 + $0x1], 0  ;;  %s636_s12 = smov 0   ;;  %s638_s13 = smov 0  }
   0x2   :  { %s640_s14 = smov 0   ;;  %s642_s15 = smov 0  }
   0x3   :  { %s644_s16 = smov 0   ;;  %s646_s17 = smov 0  }
   0x4 LB: > { %s452_s18 = sadd.s32 4294967295, %s612_s17   ;;  %s453_s19 = sadd.s32 4294967294, %s612_s17   ;;  %s612_s17 = sphi %s646_s17, %s16_s17   ;;  %s608_s16 = sphi %s644_s16, %s765_s16   ;;  %s604_s15 = sphi %s642_s15, %s764_s15   ;;  %s600_s14 = sphi %s640_s14, %s763_s14   ;;  %s596_s13 = sphi %s638_s13, %s762_s13   ;;  %s592_s12 = sphi %s636_s12, %s761_s12  }
   0x5   : > { %s28_s20 = sadd.s32 1, %s608_s16  ;;  %s121_s21 = sadd.s32 1, %s600_s14 }
   0x6   : > { %p30_p0 = scmp.ge.s32.totalorder %s28_s20, 2  ;;  %p131_p1 = scmp.ne.s32.totalorder %s600_s14, %s596_s13 }
   0x7   : > { %p132_p2 = scmp.eq.s32.totalorder %s452_s18, 1  ;;  %p137_p3 = scmp.ne.s32.totalorder %s596_s13, %s592_s12 }
   0x8   : > { %s767_s20 = smov (%p30_p0, %s28_s20), 0  ;;  %p138_p5 = scmp.eq.s32.totalorder %s453_s19, 1 }
   0x9   : > { %p676_p4 = por %p132_p2, %p131_p1  ;;  %s116_s23 = ssub.s32 %s608_s16, %s767_s20 }
   0xa   : > { %p456_p6 = scmp.ge.s32.totalorder %s612_s17, 1  ;;  %p119_p7 = scmp.eq.s32.totalorder %s116_s23, 0 }
   0xb   : > { %p683_p8 = por %p138_p5, %p137_p3  ;;  %p188_p9 = scmp.lt.s32.totalorder %s612_s17, 3 }
   0xc   : > { %s689_s25 = scalar_select %p119_p7, %s600_s14, %s121_s21  }
   0xd   : > { %p189_p10 = pnand %p456_p6, %p188_p9 }
   0xe   : > { %p230_p11 = scmp.lt.s32.totalorder (!%p189_p10), %s604_s15, 1  ;;  %s227_s11 = sand.u32 (!%p189_p10), 1, %s596_s13  }
   0xf   : > { %192 = sbr.rel (%p189_p10) target bundleno = 328 (0x148), region = 32  ;;  %s457_s18 = sshll.u32 (!%p189_p10), %s227_s11, 4 }
  0x10   : > { %s468_s19 = sshll.u32 (!%p189_p10), %s604_s15, 4 }
  0x14   : > { %s693_s26 = scalar_select %p230_p11, %s604_s15, 1  ;;  %v614_v6 = vmov 255.0   ;;  %v615_v9 = vmov 0  }
  0x15   : > { %528 = vrcp.f32 %v614_v6  ;;  %526 = vset.pattern.permute.xlu1 %v615_v9  ;;  %527 = vset.pattern.permute.xlu0 %v615_v9  ;;  %s325_s15 = scalar_lea.sflag [#allocation3], %s227_s11 }
  0x16   : > { %s467_s27 = sshll.u32 %s693_s26, 4  ;;  %s460_s4 = sshll.u32 %s693_s26, 3 }
  0x17   : > { %s238_s30 = scalar_lea.vmem %s755_s0, %s467_s27  ;;  %s252_s7 = scalar_lea.vmem %s757_s2, %s460_s4 }
  0x18   : > { %v699_v0 = vld [vmem:[%s238_s30] sm:$0xff]  ;;  %v701_v1 = vld [vmem:[%s238_s30 + $0x8] sm:$0xff]  ;;  %s245_s10 = scalar_lea.vmem %s756_s1, %s460_s4  ;;  %s338_s26 = scalar_lea.hbm %s758_s3, %s468_s19 }
  0x19   : > { %v255_v2 = vadd.f32 %v701_v1, %v699_v0  ;;  %v258_v3 = vmul.f32 %v699_v0, %v699_v0  ;;  %v259_v4 = vmul.f32 %v701_v1, %v701_v1  ;;  %v290_v40 = vld [vmem:[%s252_s7] sm:$0xff]  ;;  %s229_s27 = scalar_lea.vmem [#allocation2], %s457_s18  ;;  %s342_s29 = sshll.u32 %s338_s26, 4  ;;  %s343_s29 = int_to_ptr.hbm [resolvable:$true] %s342_s29 }
  0x1a   : > { %v289_v46 = vld [vmem:[%s245_s10] sm:$0xff]  ;;  %s340_s28 = sshll.u32 %s229_s27, 4  ;;  %s548_s30 = sshra.s32 %s343_s29, 4  ;;  %s341_s28 = int_to_ptr.vmem [resolvable:$true] %s340_s28  ;;  %s549_s30 = int_to_ptr.hbm [resolvable:$true] %s548_s30 }
  0x1b   : > { %256 = vadd.xlane.f32.xlu0 %v255_v2  ;;  %v260_v5 = vadd.f32 %v259_v4, %v258_v3  ;;  %v529_v7 = vpop.eup %528  ;;  %s550_s4 = scalar_lea.hbm %s549_s30, 16  ;;  %s554_s7 = scalar_lea.hbm %s758_s3, 32 }
  0x1c   : > { %v268_v8 = vmul.f32 255.0, %v529_v7  ;;  %vm272_vm0 = vweird.f32 %v529_v7  ;;  %p551_p12 = scmp.ne.s32.totalorder %s549_s30, %s550_s4  ;;  %p555_p1 = scmp.lt.s32.totalorder %s549_s30, %s758_s3 }
  0x1d   : > { %p556_p2 = scmp.lt.s32.totalorder %s554_s7, %s550_s4 }
  0x1e   : > { %v269_v10 = vsub.f32 1.0, %v268_v8  ;;  %p552_p13 = pnand %p551_p12, %p676_p4 }
  0x1f   : > { %p557_p3 = por %p556_p2, %p555_p1 }
  0x20   : > { %v270_v12 = vmul.f32 %v529_v7, %v269_v10  ;;  %p553_p0 = pneg %p552_p13 }
  0x22   : > { %v271_v15 = vadd.f32 %v529_v7, %v270_v12  ;;  %p558_p5 = pnand %p557_p3, %p553_p0 }
  0x23   : > { %261 = vadd.xlane.f32.xlu0 %v260_v5 }
  0x24   : > { %v273_v17 = vsel %vm272_vm0, %v529_v7, %v271_v15 }
  0x8e   : > { %v257_v11 = vpop.xlane.xlu0 %256 }
  0x8f   : > { %v263_v13 = vmul.f32 0.00390625, %v257_v11 }
  0x91   : > { %v264_v14 = vmul.f32 256.0, %v263_v13 }
  0x93   : > { %v265_v16 = vmul.f32 %v264_v14, %v263_v13 }
  0x96   : > { %v262_v18 = vpop.xlane.xlu0 %261 }
  0x97   : > { %v266_v19 = vsub.f32 %v262_v18, %v265_v16 }
  0x99   : > { %v274_v20 = vmul.f32 %v273_v17, %v266_v19 }
  0x9b   : > { %v275_v21 = vmax.f32 %v274_v20, 0.0 }
  0x9d   : > { %530 = vrsqrt.f32 %v275_v21  ;;  %vm283_vm1 = vcmp.eq.f32.partialorder %v275_v21, inf  ;;  %v286_v29 = vand.u32 2147483648, %v275_v21  ;;  %vm285_vm2 = vcmp.eq.f32.partialorder %v275_v21, 0.0 }
  0xa3   : > { %v531_v22 = vpop.eup %530 }
  0xa4   : > { %v277_v23 = vmul.f32 %v531_v22, %v275_v21 }
  0xa6   : > { %v278_v24 = vmul.f32 %v531_v22, %v277_v23 }
  0xa8   : > { %v279_v25 = vmul.f32 0.5, %v278_v24 }
  0xaa   : > { %v280_v26 = vsub.f32 1.5, %v279_v25 }
  0xac   : > { %v281_v27 = vmul.f32 %v531_v22, %v280_v26 }
  0xae   : > { %v282_v28 = vmul.f32 %v281_v27, %v275_v21 }
  0xb0   : > { %v284_v30 = vsel %vm283_vm1, %v275_v21, %v282_v28 }
  0xb1   : > { %v287_v31 = vsel %vm285_vm2, %v286_v29, %v284_v30 }
  0xb2   : > { %v288_v32 = vadd.f32 1e-05, %v287_v31 }
  0xb4   : > { %532 = vrcp.f32 %v288_v32  ;;  %v302_v36 = vand.u32 2147483648, %v288_v32  ;;  %v300_v38 = vand.u32 2147483647, %v288_v32  ;;  %vm296_vm4 = vweird.f32 %v288_v32 }
  0xb6   : > { %v303_v41 = vor.u32 1.1754944e-38, %v302_v36  ;;  %vm301_vm6 = vcmp.eq.f32.partialorder %v300_v38, 8.507059e+37 }
  0xba   : > { %v533_v33 = vpop.eup %532 }
  0xbb   : > { %v292_v34 = vmul.f32 %v533_v33, %v288_v32  ;;  %vm297_vm3 = vweird.f32 %v533_v33 }
  0xbc   : > { %vm298_vm5 = vmor %vm296_vm4, %vm297_vm3 }
  0xbd   : > { %v293_v35 = vsub.f32 1.0, %v292_v34 }
  0xbf   : > { %v294_v37 = vmul.f32 %v533_v33, %v293_v35 }
  0xc1   : > { %v295_v39 = vadd.f32 %v533_v33, %v294_v37 }
  0xc3   : > { %v299_v42 = vsel %vm298_vm5, %v533_v33, %v295_v39 }
  0xc4   : > { %v304_v43 = vsel %vm301_vm6, %v303_v41, %v299_v42 }
  0xc5   : > { %v305_v44 = vmul.f32 %v304_v43, %v290_v40 }
  0xc7   : > { %310 = vperm.xlu1 %526, %v305_v44   ;;  %v306_v45 = vmul.f32 %v305_v44, %v263_v13 }
  0xc9   : > { %v307_v47 = vsub.f32 %v289_v46, %v306_v45 }
  0xcf   : > { %317 = vperm.xlu1 %526, %v307_v47  }
 0x139   : > { %v311_v48 = vpop.permute.xlu1 %310 }
 0x13a   : > { %v313_v49 = vmul.f32 %v311_v48, %v699_v0  ;;  %v314_v50 = vmul.f32 %v311_v48, %v701_v1 }
 0x141   : > { %v318_v51 = vpop.permute.xlu1 %317 }
 0x142   : > { %v320_v52 = vadd.f32 %v318_v51, %v313_v49  ;;  %v321_v53 = vadd.f32 %v318_v51, %v314_v50 }
 0x144   : > { %322 = vst [vmem:[%s229_s27] sm:$0xff] %v320_v52 }
 0x145   : > { %323 = vst [vmem:[%s229_s27 + $0x8] sm:$0xff] %v321_v53 }
 0x146   : > { %561 = shalt.err (!%p558_p5)
}
 0x147   : > { %469 = dma.vmem_to_hbm [thread:$0]  (%p676_p4), %s341_s28, 256, %s343_s29, %s325_s15  }
 0x148 PF: > { %p475_p6 = scmp.ge.s32.totalorder %s612_s17, 2  ;;  %s354_s10 = sand.u32 1, %s592_s12  }
 0x149   : > { %s355_s11 = scalar_lea.sflag [#allocation3], %s354_s10 }
 0x14a   : > { %p472_p7 = pnand %p475_p6, %p683_p8 }
 0x14c   : > { %p473_p9 = pneg %p472_p7 }
 0x14e   : > { %587 = dma.done.wait (%p473_p9), %s355_s11, 256  }
 0x14f   : > { %589 = vsyncadd (%p473_p9), %s355_s11, 4294967040  ;;  %s16_s17 = sadd.s32 1, %s612_s17   ;;  %s761_s12 = smov %s596_s13 }
 0x150   : > { %p13_p10 = scmp.ge.s32.totalorder %s16_s17, 4   ;;  %s762_s13 = smov %s600_s14 }
 0x151   : > { %s763_s14 = smov %s689_s25  ;;  %s764_s15 = smov %s608_s16 }
 0x152   : > { %s765_s16 = smov %s767_s20  ;;  %15 = sbr.rel (!%p13_p10) target bundleno = 4 (0x4), region = 73 }
 0x157   :  { %361 = vsyncpa [#allocation3], 1 }
 0x158   :  { %363 = vsyncpa [#allocation3 + $0x1], 1 }

</bundles_post_ra>
